<compile_context>
chip_gen: v6e
topology: v6e:2x2x1
jax: 0.10.0
libtpu: 0.0.40
codegen_flags: <defaults>
</compile_context>

<pallas_src>
import math

import jax
import jax.numpy as jnp
from jax.experimental import pallas as pl
from jax.experimental.pallas import tpu as pltpu


# ---------------------------------------------------------------------------
# Chip-aware tiling configuration
# ---------------------------------------------------------------------------
def _chip_config():
    kind = ""
    try:
        kind = jax.devices()[0].device_kind.lower()
    except Exception:
        pass
    vmem_cap = None
    try:  # refine the scoped-VMEM cap from the hardware query when available
        vmem_cap = int(pltpu.get_tpu_info().vmem_capacity_bytes)
    except Exception:
        pass

    if ("v5 lite" in kind) or ("v5e" in kind) or ("v5lite" in kind):
        # v5e MXU is 4x(128x128): 256-wide tiles only add VMEM/vreg pressure.
        cfg = dict(tm=128, tn=128, tk=512, vmem_limit=32 << 20, n_cores=1,
                   deep_buffer=True)
    elif "v6" in kind:
        # ~10 MiB of double-buffered f32 blocks at 512/512/1024; well under the
        # 128 MiB physical VMEM, so raise the scoped limit explicitly.
        cfg = dict(tm=512, tn=512, tk=1024, vmem_limit=64 << 20, n_cores=1,
                   deep_buffer=True)
    elif "v7" in kind:
        # v7x: 64 MiB VMEM, 2 TensorCores -> separately derived budget.
        cfg = dict(tm=256, tn=256, tk=512, vmem_limit=48 << 20, n_cores=2,
                   deep_buffer=False)
    else:
        cfg = dict(tm=256, tn=256, tk=512, vmem_limit=None, n_cores=1,
                   deep_buffer=False)

    if vmem_cap is not None and cfg["vmem_limit"] is not None:
        cfg["vmem_limit"] = min(cfg["vmem_limit"], (vmem_cap * 3) // 4)
    return cfg


def _round_up(x, m):
    return pl.cdiv(x, m) * m


def _plan_kn(K, N, cfg=None):
    """(tk, tn, Kp, Np) tile plan.  Depends only on (K, N) + chip, so a cached
    right-hand side (the TT weight) can be pre-padded/pre-cast at init."""
    cfg = cfg if cfg is not None else _chip_config()
    tk = min(cfg["tk"], K)
    tn = min(cfg["tn"], N)
    Kp = _round_up(K, tk)
    Np = _round_up(N, tn)
    # v7x (2 TensorCores): never collapse the parallel N axis to a single block.
    if cfg["n_cores"] >= 2 and Np >= 256 and Np // tn < 2:
        tn = max(128, ((Np // 2) // 128) * 128)
        Np = _round_up(N, tn)
    return tk, tn, Kp, Np


def prepare_rhs(b, compute_dtype):
    """Pad + cast a (K, N) RHS ONCE to the chip tile plan so every subsequent
    pallas_matmul(..., b_prepared=True) skips all wrapper-side passes over B."""
    K, N = b.shape
    _, _, Kp, Np = _plan_kn(K, N)
    if (Kp, Np) != (K, N):
        b = jnp.pad(b, ((0, Kp - K), (0, Np - N)))
    return b.astype(compute_dtype)


# ---------------------------------------------------------------------------
# Pallas matmul kernels (f32 accumulation on the MXU)
# ---------------------------------------------------------------------------
def _mm_kernel(a_ref, b_ref, o_ref):
    # K fits in one block: single MXU pass straight into the output tile
    # (no accumulator scratch, no pl.when init/finalize branches).
    o_ref[...] = jnp.dot(
        a_ref[...], b_ref[...], preferred_element_type=jnp.float32
    ).astype(o_ref.dtype)


def _mm_kernel_ksplit(a_ref, b_ref, o_ref):
    # K is tiled: accumulate into the f32 output block, which stays resident
    # across the "arbitrary" K grid axis.
    @pl.when(pl.program_id(2) == 0)
    def _():
        o_ref[...] = jnp.zeros_like(o_ref)

    o_ref[...] += jnp.dot(a_ref[...], b_ref[...], preferred_element_type=jnp.float32)


def pallas_matmul(a, b, *, b_prepared=False, b_logical_shape=None):
    """C = A @ B with f32 MXU accumulation and f32 output.

    If b_prepared=True, `b` was produced by prepare_rhs: it is already padded
    to the chip tile plan and already in the compute dtype; b_logical_shape is
    its un-padded (K, N).  A is cast exactly once to b.dtype.
    """
    cfg = _chip_config()
    M, Ka = a.shape
    if b_prepared:
        K, N = b_logical_shape
    else:
        K, N = b.shape
    assert Ka == K, (a.shape, (K, N))

    tk, tn, Kp, Np = _plan_kn(K, N, cfg)
    compute_dtype = b.dtype
    a = a.astype(compute_dtype)  # single cast of the activations
    if not b_prepared and (Kp, Np) != (K, N):
        b = jnp.pad(b, ((0, Kp - K), (0, Np - N)))

    tm = min(cfg["tm"], M)
    Mp = _round_up(M, tm)
    if (Mp, Kp) != (M, K):
        a = jnp.pad(a, ((0, Mp - M), (0, Kp - K)))
    gm, gn, gk = Mp // tm, Np // tn, Kp // tk

    isz = a.dtype.itemsize
    cost = pl.CostEstimate(
        flops=2 * Mp * Np * Kp,
        transcendentals=0,
        bytes_accessed=(Mp * Kp + Kp * Np) * isz + Mp * Np * 4,
    )

    if gk == 1:
        # Pick the grid order so the bigger operand stays block-invariant on
        # the inner axis (DMA'd once overall); the smaller one is re-streamed.
        if gm > 1 and gn > 1 and (Kp * Np) >= (Mp * Kp):
            grid = (gn, gm)
            a_spec = pl.BlockSpec((tm, Kp), lambda j, i: (i, 0))
            b_spec = pl.BlockSpec((Kp, tn), lambda j, i: (0, j))
            o_spec = pl.BlockSpec((tm, tn), lambda j, i: (i, j))
        else:
            grid = (gm, gn)
            a_spec = pl.BlockSpec((tm, Kp), lambda i, j: (i, 0))
            b_spec = pl.BlockSpec((Kp, tn), lambda i, j: (0, j))
            o_spec = pl.BlockSpec((tm, tn), lambda i, j: (i, j))
        out = pl.pallas_call(
            _mm_kernel,
            out_shape=jax.ShapeDtypeStruct((Mp, Np), jnp.float32),
            grid_spec=pltpu.PrefetchScalarGridSpec(
                num_scalar_prefetch=0,
                grid=grid,
                in_specs=[a_spec, b_spec],
                out_specs=o_spec,
            ),
            compiler_params=pltpu.CompilerParams(
                dimension_semantics=("parallel", "parallel"),
                vmem_limit_bytes=cfg["vmem_limit"],
            ),
            cost_estimate=cost,
        )(a, b)
    else:
        if cfg["deep_buffer"] and compute_dtype == jnp.float32:
            # f32 schedule sits below machine balance: deeper input buffering
            # hides exposed DMA (skipped on v7x to respect its VMEM budget).
            a_spec = pl.BlockSpec((tm, tk), lambda i, j, k: (i, k),
                                  pipeline_mode=pl.Buffered(3))
            b_spec = pl.BlockSpec((tk, tn), lambda i, j, k: (k, j),
                                  pipeline_mode=pl.Buffered(3))
        else:
            a_spec = pl.BlockSpec((tm, tk), lambda i, j, k: (i, k))
            b_spec = pl.BlockSpec((tk, tn), lambda i, j, k: (k, j))
        out = pl.pallas_call(
            _mm_kernel_ksplit,
            out_shape=jax.ShapeDtypeStruct((Mp, Np), jnp.float32),
            grid_spec=pltpu.PrefetchScalarGridSpec(
                num_scalar_prefetch=0,
                grid=(gm, gn, gk),
                in_specs=[a_spec, b_spec],
                out_specs=pl.BlockSpec((tm, tn), lambda i, j, k: (i, j)),
            ),
            compiler_params=pltpu.CompilerParams(
                dimension_semantics=("parallel", "parallel", "arbitrary"),
                vmem_limit_bytes=cfg["vmem_limit"],
            ),
            cost_estimate=cost,
        )(a, b)

    if (Mp, Np) != (M, N):
        out = out[:M, :N]
    return out


# ---------------------------------------------------------------------------
# TTLinear (JAX / Pallas port of the PyTorch module)
# ---------------------------------------------------------------------------
class TTLinearPallas:
    """JAX/Pallas port of TTLinear.

    torch.einsum('az,zbz,...,zk->ab...k') repeats the rank index inside the
    middle operands, so only their diagonals p[z, :, z] contribute -- we keep
    that exact semantic.  The dense (in_total, out_total) weight is assembled
    once at construction, then pre-padded to the chip tile plan and pre-cast to
    the compute dtype (bf16 by default, f32 accumulation); every forward is a
    single Pallas MXU matmul with no wrapper-side pad/cast passes.
    """

    def __init__(self, in_features, out_features, rank=32, std=1, *, key,
                 use_bf16=True):
        self.lfeat = len(in_features)
        if self.lfeat == 1:
            lst = list(in_features) + list(out_features)
        else:  # lfeat >= 2
            lst = [i * j for i, j in zip(in_features, out_features)]
        last = len(lst)
        var = last / rank ** (1 / (2 * std ** 0.5 * last))
        c = 1.0 / last

        keys = jax.random.split(key, last)
        params = [jnp.clip(jax.random.normal(keys[0], (lst[0], rank)), -c, c) * var]
        for i, ij in enumerate(lst[1:-1]):
            params.append(
                jnp.clip(jax.random.normal(keys[i + 1], (rank, ij, rank)), -c, c) * var
            )
        params.append(
            jnp.clip(jax.random.normal(keys[-1], (rank, lst[-1])), -c, c) * var
        )
        self.params = params
        self.lst = lst
        # shape = [in0, out0, in1, out1, ...]; permute gathers in-dims then out-dims
        self.shape = [p for ij in zip(in_features, out_features) for p in ij]
        self.permute = list(range(0, 2 * self.lfeat - 1, 2)) + list(
            range(1, 2 * self.lfeat, 2)
        )
        self.in_total = math.prod(in_features)
        self.out_total = math.prod(out_features)
        self.use_bf16 = use_bf16
        self.compute_dtype = jnp.bfloat16 if use_bf16 else jnp.float32

        # One-time weight assembly (hoisted off the per-call path), then
        # pre-pad + pre-cast once so the forward has zero wrapper passes.
        self._w = self._assemble_weight()                       # f32, un-padded
        self._w_prepared = prepare_rhs(self._w, self.compute_dtype)

    def _assemble_weight(self):
        params = self.params
        rhs = params[-1]                       # (rank, lst[-1])
        for p in reversed(params[1:-1]):       # middle cores: only the diagonal matters
            diag = jnp.diagonal(p, axis1=0, axis2=2).T          # (rank, lst_mid)
            rhs = (diag[:, :, None] * rhs[:, None, :]).reshape(p.shape[0], -1)
        # Full core tensor flattened: (lst[0], prod(lst[1:])) -- Pallas MXU matmul (f32).
        core = pallas_matmul(params[0], rhs)
        w = core.reshape(self.shape)
        w = jnp.transpose(w, self.permute)
        return w.reshape(self.in_total, self.out_total)

    def weight(self):
        return self._w

    def __call__(self, x):
        # Single pallas_call per forward: x @ W_prepared; x is cast exactly once
        # to the compute dtype inside pallas_matmul, W is already padded + cast.
        # TODO(synk): for very large in_total*out_total, switch to a rank-factored
        # (two-matmul) forward so per-call HBM traffic stays rank-bounded instead
        # of streaming the dense W.
        return pallas_matmul(
            x, self._w_prepared, b_prepared=True,
            b_logical_shape=(self.in_total, self.out_total),
        )


# ---------------------------------------------------------------------------
if __name__ == "__main__":
    key = jax.random.PRNGKey(0)
    k_param, k_x, k_param3, k_x3 = jax.random.split(key, 4)

    # --- lfeat = 2, default bf16 weight streaming ---------------------------
    in_features = [8, 16]    # in_total  = 128
    out_features = [8, 16]   # out_total = 128
    rank, batch = 32, 16

    layer = TTLinearPallas(in_features, out_features, rank=rank, std=1,
                           key=k_param)                 # use_bf16=True (default)
    x = jax.random.normal(k_x, (batch, math.prod(in_features)), dtype=jnp.float32)
    y = jax.block_until_ready(layer(x))
    assert y.shape == (batch, math.prod(out_features))

    # Pure-JAX reference mirroring the torch forward ('az,zb->ab' for 2 cores).
    ref_core = jnp.einsum("az,zb->ab", layer.params[0], layer.params[-1])
    ref_w = (
        ref_core.reshape(layer.shape)
        .transpose(layer.permute)
        .reshape(layer.in_total, layer.out_total)
    )
    # Precision-matched reference (bf16 operands, f32 accumulation).
    ref_y_bf16 = jnp.dot(x.astype(jnp.bfloat16), ref_w.astype(jnp.bfloat16),
                         preferred_element_type=jnp.float32)
    assert jnp.allclose(y, ref_y_bf16, rtol=2e-2, atol=5e-2), "lfeat=2 mismatch"
    # Loose drift check against the full-f32 torch semantics.
    assert jnp.allclose(y, x @ ref_w, rtol=5e-2, atol=1.5e-1), "lfeat=2 f32 drift"

    # --- lfeat = 3, f32 path (exercises the middle-core diagonal path) ------
    in3, out3, rank3, batch3 = [4, 4, 2], [2, 4, 4], 8, 8
    layer3 = TTLinearPallas(in3, out3, rank=rank3, std=1, key=k_param3,
                            use_bf16=False)
    x3 = jax.random.normal(k_x3, (batch3, math.prod(in3)), dtype=jnp.float32)
    y3 = jax.block_until_ready(layer3(x3))
    assert y3.shape == (batch3, math.prod(out3))

    # torch.einsum('az,zbz,zc->abc') keeps only the diagonal of the middle core.
    diag1 = jnp.diagonal(layer3.params[1], axis1=0, axis2=2).T
    ref_core3 = jnp.einsum("az,zb,zc->abc", layer3.params[0], diag1, layer3.params[2])
    ref_w3 = (
        ref_core3.reshape(layer3.shape)
        .transpose(layer3.permute)
        .reshape(layer3.in_total, layer3.out_total)
    )
    ref_y3 = x3 @ ref_w3
    assert jnp.allclose(y3, ref_y3, rtol=2e-2, atol=2e-2), "lfeat=3 mismatch"

    print("KERNEL_OK")
</pallas_src>

<mosaic_0001>
module attributes {stable_mosaic.version = 11 : i64} {
  func.func @_mm_kernel(%arg0: i32, %arg1: i32, %arg2: memref<64x32xf32, #tpu.memory_space<vmem>>, %arg3: memref<32x256xf32, #tpu.memory_space<vmem>>, %arg4: memref<64x256xf32, #tpu.memory_space<vmem>>) attributes {dimension_semantics = [#tpu.dimension_semantics<parallel>, #tpu.dimension_semantics<parallel>], iteration_bounds = array<i64: 1, 1>, scalar_prefetch = 0 : i64, scratch_operands = 0 : i64, tpu.core_type = #tpu.core_type<tc>, window_params = [{transform_indices = @transform_0, window_bounds = array<i64: 64, 32>}, {transform_indices = @transform_1, window_bounds = array<i64: 32, 256>}, {transform_indices = @transform_2, window_bounds = array<i64: 64, 256>}]} {
    %c0 = arith.constant 0 : index
    %c0_0 = arith.constant 0 : index
    %0 = vector.load %arg2[%c0, %c0_0] : memref<64x32xf32, #tpu.memory_space<vmem>>, vector<64x32xf32>
    %c0_1 = arith.constant 0 : index
    %c0_2 = arith.constant 0 : index
    %1 = vector.load %arg3[%c0_1, %c0_2] : memref<32x256xf32, #tpu.memory_space<vmem>>, vector<32x256xf32>
    %cst = arith.constant dense<0.000000e+00> : vector<64x256xf32>
    %2 = tpu.matmul %0, %1, %cst {dimension_numbers = #tpu.dot_dimension_numbers<[1], [0], [0], [1], [0, 0, 1, 1], [], []>} : vector<64x32xf32>, vector<32x256xf32>, vector<64x256xf32> -> vector<64x256xf32>
    %c0_3 = arith.constant 0 : index
    %c0_4 = arith.constant 0 : index
    %3 = vector.load %arg4[%c0_3, %c0_4] : memref<64x256xf32, #tpu.memory_space<vmem>>, vector<64x256xf32>
    tpu.vector_store %arg4[%c0_3, %c0_4], %2 {strides = array<i32>} : memref<64x256xf32, #tpu.memory_space<vmem>>, vector<64x256xf32>,
    return
  }
  func.func @transform_0(%arg0: i32, %arg1: i32) -> (i32, i32) {
    %c0_i32 = arith.constant 0 : i32
    %c0_i32_0 = arith.constant 0 : i32
    return %arg0, %c0_i32 : i32, i32
  }
  func.func @transform_1(%arg0: i32, %arg1: i32) -> (i32, i32) {
    %c0_i32 = arith.constant 0 : i32
    %c0_i32_0 = arith.constant 0 : i32
    return %c0_i32, %arg1 : i32, i32
  }
  func.func @transform_2(%arg0: i32, %arg1: i32) -> (i32, i32) {
    %c0_i32 = arith.constant 0 : i32
    return %arg0, %arg1 : i32, i32
  }
}

</mosaic_0001>

<bundles_post_ra>
// kernel: tpu_custom_call.1
= control target key start
LH: loop header
LB: loop body
LE: loop exit
PB: predicated region body
PF: predicated region fallthrough
CT: control target
= control target key end

     0   :  { %s318_s0 = inlined_call_operand.vmem [shape: f32[64,32], index: 0, kind: input, shape index: {}]   ;;  %s319_s1 = inlined_call_operand.vmem [shape: f32[32,256], index: 1, kind: input, shape index: {}]   ;;  %s320_s2 = inlined_call_operand.hbm [shape: f32[64,256], index: 2, kind: output, shape index: {}]  }
   0x1   :  { %v27_v0 = vld [vmem:[%s319_s1 + $0x38] sm:$0xff]  ;;  %v26_v1 = vld [vmem:[%s319_s1 + $0x30] sm:$0xff]  ;;  %v25_v2 = vld [vmem:[%s319_s1 + $0x28] sm:$0xff] }
   0x2   :  { %77 = vmatprep.subr.mxu0 %v27_v0  ;;  %206 = vmatprep.subr.mxu1 %v27_v0  ;;  %v24_v3 = vld [vmem:[%s319_s1 + $0x20] sm:$0xff]  ;;  %v23_v4 = vld [vmem:[%s319_s1 + $0x18] sm:$0xff]  ;;  %v22_v5 = vld [vmem:[%s319_s1 + $0x10] sm:$0xff] }
   0x3   :  { %78 = vmatpush1.msra.mxu0 %v26_v1  ;;  %210 = vmatpush1.msra.mxu1 %v26_v1  ;;  %v21_v6 = vld [vmem:[%s319_s1 + $0x8] sm:$0xff]  ;;  %v20_v7 = vld [vmem:[%s319_s1] sm:$0xff] }
   0x4   :  { %79 = vmatprep.subr.mxu0 %v25_v2  ;;  %207 = vmatprep.subr.mxu1 %v25_v2 }
   0x5   :  { %80 = vmatpush1.msra.mxu0 %v24_v3  ;;  %211 = vmatpush1.msra.mxu1 %v24_v3 }
   0x6   :  { %81 = vmatprep.subr.mxu0 %v23_v4  ;;  %208 = vmatprep.subr.mxu1 %v23_v4 }
   0x7   :  { %7 = vsyncpa [#allocation3], 0  ;;  %82 = vmatpush1.msra.mxu0 %v22_v5  ;;  %212 = vmatpush1.msra.mxu1 %v22_v5  ;;  %v12_v8 = vld [vmem:[%s318_s0] sm:$0xff]  ;;  %vm28_vm0 = vcmask 261120   ;;  %v240_v10 = vmov 0.0   ;;  %v13_v11 = vld [vmem:[%s318_s0 + $0x8] sm:$0xff] }
   0x8   :  { %83 = vmatprep.subr.mxu0 %v21_v6  ;;  %209 = vmatprep.subr.mxu1 %v21_v6  ;;  %v16_v9 = vld [vmem:[%s318_s0 + $0x20] sm:$0xff]  ;;  %v17_v12 = vld [vmem:[%s318_s0 + $0x28] sm:$0xff]  ;;  %v14_v13 = vld [vmem:[%s318_s0 + $0x10] sm:$0xff] }
   0x9   :  { %84 = vmatpush1.msra.mxu0 %v20_v7  ;;  %213 = vmatpush1.msra.mxu1 %v20_v7  ;;  %v18_v14 = vld [vmem:[%s318_s0 + $0x30] sm:$0xff]  ;;  %v15_v15 = vld [vmem:[%s318_s0 + $0x18] sm:$0xff] }
   0xa   :  { %117 = vmatprep.mubr.f32.mxu0 %v240_v10  ;;  %141 = vmatprep.mubr.f32.mxu1 %v240_v10  ;;  %v19_v16 = vld [vmem:[%s318_s0 + $0x38] sm:$0xff]  ;;  %s241_s0 = smov [#allocation2]  }
   0xb   :  { %198 = vmatmul.mubr.msk.f32.vlgmr.msra.gmra.mxu0 %vm28_vm0, %v12_v8  ;;  %202 = vmatmul.mubr.msk.f32.vlgmr.msra.gmra.mxu1 %vm28_vm0, %v16_v9  ;;  %s187_s12 = sshll.u32 %s241_s0, 4  ;;  %s188_s12 = int_to_ptr.vmem [resolvable:$true] %s187_s12 }
   0xc   :  { %123 = vmatprep.mubr.f32.mxu0 %v240_v10  ;;  %147 = vmatprep.mubr.f32.mxu1 %v240_v10  ;;  %s218_s13 = scalar_lea.vmem %s188_s12, 2048  ;;  %p223_p1 = scmp.lt.s32.totalorder %s188_s12, %s188_s12 }
   0xd   :  { %p219_p0 = scmp.ne.s32.totalorder %s188_s12, %s218_s13  ;;  %p224_p2 = scmp.lt.s32.totalorder %s218_s13, %s218_s13 }
   0xf   :  { %199 = vmatmul.mubr.msk.f32.gmra.mxu0 %vm28_vm0, %v13_v11  ;;  %203 = vmatmul.mubr.msk.f32.gmra.mxu1 %vm28_vm0, %v17_v12  ;;  %p225_p3 = por %p224_p2, %p223_p1 }
  0x10   :  { %129 = vmatprep.mubr.f32.mxu0 %v240_v10  ;;  %153 = vmatprep.mubr.f32.mxu1 %v240_v10 }
  0x11   :  { %p226_p4 = pnand %p225_p3, %p219_p0 }
  0x13   :  { %200 = vmatmul.mubr.msk.f32.gmra.mxu0 %vm28_vm0, %v14_v13  ;;  %204 = vmatmul.mubr.msk.f32.gmra.mxu1 %vm28_vm0, %v18_v14 }
  0x14   :  { %135 = vmatprep.mubr.f32.mxu0 %v240_v10  ;;  %159 = vmatprep.mubr.f32.mxu1 %v240_v10 }
  0x17   :  { %201 = vmatmul.mubr.msk.f32.gmra.mxu0 %vm28_vm0, %v15_v15  ;;  %205 = vmatmul.mubr.msk.f32.gmra.mxu1 %vm28_vm0, %v19_v16 }
  0xcb   :  { %v119_v17 = vpop.f32.mrf.mxu0  ;;  %v143_v18 = vpop.f32.mrf.mxu1 }
  0xcc   :  { %166 = vst [vmem:[#allocation2] sm:$0xff] %v119_v17  ;;  %174 = vst [vmem:[#allocation2 + $0x40] sm:$0xff] %v143_v18 }
  0xcd   :  { %v121_v19 = vpop.f32.mrf.mxu0  ;;  %v145_v20 = vpop.f32.mrf.mxu1 }
  0xce   :  { %167 = vst [vmem:[#allocation2 + $0x8] sm:$0xff] %v121_v19  ;;  %175 = vst [vmem:[#allocation2 + $0x48] sm:$0xff] %v145_v20 }
  0xcf   :  { %v125_v21 = vpop.f32.mrf.mxu0  ;;  %v149_v22 = vpop.f32.mrf.mxu1 }
  0xd0   :  { %168 = vst [vmem:[#allocation2 + $0x10] sm:$0xff] %v125_v21  ;;  %176 = vst [vmem:[#allocation2 + $0x50] sm:$0xff] %v149_v22 }
  0xd1   :  { %v127_v23 = vpop.f32.mrf.mxu0  ;;  %v151_v24 = vpop.f32.mrf.mxu1 }
  0xd2   :  { %169 = vst [vmem:[#allocation2 + $0x18] sm:$0xff] %v127_v23  ;;  %177 = vst [vmem:[#allocation2 + $0x58] sm:$0xff] %v151_v24 }
  0xd3   :  { %v131_v25 = vpop.f32.mrf.mxu0  ;;  %v155_v26 = vpop.f32.mrf.mxu1 }
  0xd4   :  { %170 = vst [vmem:[#allocation2 + $0x20] sm:$0xff] %v131_v25  ;;  %178 = vst [vmem:[#allocation2 + $0x60] sm:$0xff] %v155_v26 }
  0xd5   :  { %v133_v27 = vpop.f32.mrf.mxu0  ;;  %v157_v28 = vpop.f32.mrf.mxu1 }
  0xd6   :  { %171 = vst [vmem:[#allocation2 + $0x28] sm:$0xff] %v133_v27  ;;  %179 = vst [vmem:[#allocation2 + $0x68] sm:$0xff] %v157_v28 }
  0xd7   :  { %v137_v29 = vpop.f32.mrf.mxu0  ;;  %v161_v30 = vpop.f32.mrf.mxu1 }
  0xd8   :  { %172 = vst [vmem:[#allocation2 + $0x30] sm:$0xff] %v137_v29  ;;  %180 = vst [vmem:[#allocation2 + $0x70] sm:$0xff] %v161_v30 }
  0xd9   :  { %v139_v31 = vpop.f32.mrf.mxu0  ;;  %v163_v32 = vpop.f32.mrf.mxu1 }
  0xda   :  { %173 = vst [vmem:[#allocation2 + $0x38] sm:$0xff] %v139_v31  ;;  %181 = vst [vmem:[#allocation2 + $0x78] sm:$0xff] %v163_v32 }
  0xdb   :  { %229 = shalt.err (!%p226_p4)
}
  0xdc   :  { %s242_s14 = smov 256   ;;  %s243_s15 = smov 16  }
  0xdd   :  { %193 = dma.vmem_to_hbm [thread:$0]  %s188_s12, 2048, %s320_s2, [#allocation3], %s242_s14, %s242_s14, %s243_s15  }
  0xde   :  { %238 = dma.done.wait [#allocation3], 2048  }
  0xdf   :  { %239 = vsyncadd [#allocation3], 4294965248 }
  0xe0   :  { %197 = vsyncpa [#allocation3], 1 }

</bundles_post_ra>
